<compile_context>
chip_gen: v6e
topology: v6e:2x2x1
jax: 0.10.0
libtpu: 0.0.40
codegen_flags: <defaults>
</compile_context>

<pallas_src>
import functools

import jax
import jax.numpy as jnp
import numpy as np
from jax import lax
from jax.experimental import pallas as pl
from jax.experimental.pallas import tpu as pltpu  # noqa: F401  (TPU backend)

# ----- config (synthetic, small) -----
X_LEN = 8          # config.x_len
MSTEPS = 4         # config.msteps
NFEAT = 8          # config.nfeatures
ATT = 16           # config.attention_size
BATCH = 8
# NOTE: config.ar_lambda is accepted but unused by the PyTorch auto_regressive().
# NOTE: att_m is defined in the PyTorch module but never used in forward().


def _rup8(n):
    return ((n + 7) // 8) * 8


def _pad2d(a, rows, cols):
    return jnp.pad(a, ((0, rows - a.shape[0]), (0, cols - a.shape[1])))


def _block_expand(w):
    """(T, F) -> (T*F, F) with out[t*F + f, f] = w[t, f] (zeros elsewhere).

    Turns the per-(t, f) weighted sum  sum_t x[b,t,f]*w[t,f]  into a plain 2D
    matmul  x.reshape(B, T*F) @ out  (extra terms are exact zeros), avoiding
    any odd-sublane elementwise reduce inside the kernel.
    """
    T, F = w.shape
    return (w[:, :, None] * jnp.eye(F, dtype=w.dtype)[None, :, :]).reshape(T * F, F)


def _ar_mem_kernel(x2_ref, mem2_ref, tgt_ref, p_ref, pred_ref, met_ref, *,
                   B, msteps, xlen, nf, att,
                   o_in, o_mem, o_p, o_i, o_e, o_et, o_wc, o_g, o_v):
    f32 = jnp.float32
    xlen1 = xlen + 1
    R = B * msteps

    # ---- static slices of the single packed parameter slab (one DMA) ----
    w_in = p_ref[o_in:o_in + xlen * nf, 0:nf]           # block-expanded ar_iw
    w_mem = p_ref[o_mem:o_mem + xlen1 * nf, 0:nf]       # block-expanded ar_mw
    wp = p_ref[o_p:o_p + nf + att, 0:nf]                # full pred weight (fused head)
    wi = p_ref[o_i:o_i + nf, 0:att]                     # att_i weight (in, out)
    E = p_ref[o_e:o_e + R, 0:B]                         # (R, B): row r -> batch r//msteps
    Et = p_ref[o_et:o_et + B, 0:R]                      # (B, R): group-sum matrix (E^T)
    wc = p_ref[o_wc:o_wc + att, 0:1]                    # att_comb weight as column (MXU)
    G = p_ref[o_g:o_g + 5 * nf, 0:5]                    # metric lane-group-sum matrix
    ar_ib = p_ref[o_v + 0:o_v + 1, 0:nf]
    ar_mb = p_ref[o_v + 1:o_v + 2, 0:nf]
    bp = p_ref[o_v + 2:o_v + 3, 0:nf]
    att_b = p_ref[o_v + 3:o_v + 4, 0:att]
    bc = p_ref[o_v + 4:o_v + 5, 0:1]

    # ---- auto-regressive sums as 2D matmuls against block-expanded weights ----
    input_ar = jnp.dot(x2_ref[...], w_in, preferred_element_type=f32) + ar_ib       # (B, nf)
    memory_ar = jnp.dot(mem2_ref[...], w_mem, preferred_element_type=f32) + ar_mb   # (R, nf)

    # ---- attention (att_i applied to both query and key, as in the module) ----
    query = jnp.dot(input_ar, wi, preferred_element_type=f32)                       # (B, att)
    key = jnp.dot(memory_ar, wi, preferred_element_type=f32)                        # (R, att)
    proj = jnp.tanh(jnp.dot(E, query, preferred_element_type=f32) + key + att_b)    # (R, att)
    sim = jnp.dot(proj, wc, preferred_element_type=f32) + bc                        # (R, 1) on MXU

    # Grouped softmax over the msteps rows of each batch with a single GLOBAL
    # max shift (cancels exactly in the num/den ratio).  proj is tanh-bounded,
    # so |sim - bc| <= ||wc||_1 and the cross-group spread cannot reach the f32
    # exp-underflow range for sane weights; a per-group max is not needed here.
    mx = jnp.max(sim, axis=(0, 1), keepdims=True)                                   # (1, 1)
    e = jnp.exp(sim - mx)                                                           # (R, 1)
    numden = jnp.dot(Et, jnp.concatenate([e * key, e], axis=1),
                     preferred_element_type=f32)                                    # (B, att+1)
    context = numden[:, 0:att] * pl.reciprocal(numden[:, att:att + 1], approx=False)

    # ---- prediction head: tanh( cat(input_ar, context) @ Wp + bp ), one matmul ----
    preds = jnp.tanh(
        jnp.dot(jnp.concatenate([input_ar, context], axis=1), wp,
                preferred_element_type=f32) + bp)                                   # (B, nf)
    pred_ref[...] = preds

    # ---- fused metrics: one stats block, one matmul, one sublane reduce ----
    t = tgt_ref[...]
    d = t - preds
    ad = jnp.abs(d)
    # TODO(synk): smape has no epsilon (matches the PyTorch module) -> NaN if a
    # target and prediction are both exactly zero.
    stats = jnp.concatenate(
        [d * d, ad, 2.0 * ad / (jnp.abs(t) + jnp.abs(preds)), t, t * t], axis=1)    # (B, 5*nf)
    sums = jnp.sum(jnp.dot(stats, G, preferred_element_type=f32),
                   axis=0, keepdims=True)                                           # (1, 5)
    inv_n = 1.0 / (B * nf)
    ss, sad, ssm, st, stt = (sums[:, k:k + 1] for k in range(5))
    rse = jnp.sqrt(ss) * lax.rsqrt(stt - st * st * inv_n)
    # single (1, 4) store: [loss, rse, smape, mae]
    met_ref[...] = jnp.concatenate([ss * inv_n, rse, ssm * inv_n, sad * inv_n], axis=1)


def make_ar_mem(B, xlen, msteps, nf, att):
    """Build (pack_params, forward).

    pack_params(params) -> slab  : run ONCE when parameters change (hoisted out
                                   of the per-call path).
    forward(x, mem, targets, slab) -> (preds (B,nf), metrics (1,4)=[loss,rse,smape,mae])
    """
    xlen1 = xlen + 1
    R = B * msteps
    W = max(nf, att, R, 8)   # slab lane width

    layout = [("w_in", xlen * nf), ("w_mem", xlen1 * nf), ("wp", nf + att),
              ("wi", nf), ("E", R), ("Et", B), ("wc", att), ("G", 5 * nf),
              ("vec", 5)]
    offs, rows_padded, row = {}, {}, 0
    for name, r in layout:
        offs[name] = row
        rows_padded[name] = _rup8(r)
        row += rows_padded[name]
    total_rows = row

    def pack_params(p):
        # constant 0/1 expand / group matrices for the batched grouped softmax
        # and the batched metric reduction.
        E = jnp.repeat(jnp.eye(B, dtype=jnp.float32), msteps, axis=0)    # (R, B)
        G = jnp.repeat(jnp.eye(5, dtype=jnp.float32), nf, axis=0)        # (5*nf, 5)
        vec = jnp.concatenate([_pad2d(v, 1, W) for v in (
            p["ar_ib"], p["ar_mb"], p["bp"], p["att_b"], p["bc"])], axis=0)
        mats = {"w_in": _block_expand(p["ar_iw"]),
                "w_mem": _block_expand(p["ar_mw"]),
                "wp": p["wp"], "wi": p["wi"], "E": E, "Et": E.T,
                "wc": p["wc"].T, "G": G, "vec": vec}
        return jnp.concatenate(
            [_pad2d(mats[name], rows_padded[name], W) for name, _ in layout], axis=0)

    kernel = functools.partial(
        _ar_mem_kernel, B=B, msteps=msteps, xlen=xlen, nf=nf, att=att,
        o_in=offs["w_in"], o_mem=offs["w_mem"], o_p=offs["wp"], o_i=offs["wi"],
        o_e=offs["E"], o_et=offs["Et"], o_wc=offs["wc"], o_g=offs["G"],
        o_v=offs["vec"])

    # Advisory cost so XLA can schedule neighbours around this ~1us custom call.
    flops = 2 * (B * xlen * nf * nf + R * xlen1 * nf * nf + B * nf * att
                 + R * nf * att + R * B * att + R * att + B * R * (att + 1)
                 + B * (nf + att) * nf + B * 5 * nf * 5)
    transcend = R * att + B * nf + R + 3
    bytes_accessed = 4 * (B * xlen * nf + R * xlen1 * nf + B * nf
                          + total_rows * W + B * nf + 4)
    ce = pl.CostEstimate(flops=int(flops), transcendentals=int(transcend),
                         bytes_accessed=int(bytes_accessed))

    # Single no-grid invocation: whole batch + metrics in one kernel, full
    # arrays as VMEM blocks (total resident data ~50 KiB, far under any VMEM
    # limit on v5e/v6e/v7x; no tiling needed).  On v7x this uses one TensorCore
    # only — at B=8 there is not enough work to split across the second core.
    call = pl.pallas_call(
        kernel,
        out_shape=(jax.ShapeDtypeStruct((B, nf), jnp.float32),
                   jax.ShapeDtypeStruct((1, 4), jnp.float32)),
        cost_estimate=ce,
    )

    @jax.jit
    def forward(input_x, mem, targets, slab):
        # torch: memories = cat(split(mem, x_len+1, dim=1), dim=0) -> step-major
        # rows (row r = j*B + i).  Done with reshape/transpose/reshape.
        x2 = input_x.reshape(B, xlen * nf)
        mem2 = jnp.transpose(mem.reshape(B, msteps, xlen1 * nf),
                             (1, 0, 2)).reshape(R, xlen1 * nf)
        return call(x2, mem2, targets, slab)

    return pack_params, forward


def reference_forward(input_x, mem, targets, p):
    """Pure-JAX replica of the PyTorch forward, for correctness checking."""
    B, xlen, nf = input_x.shape
    xlen1 = xlen + 1
    msteps = mem.shape[1] // xlen1
    input_ar = jnp.sum(input_x * p["ar_iw"][None], axis=1) + p["ar_ib"][0]
    memories = jnp.concatenate(jnp.split(mem, msteps, axis=1), axis=0)
    memory_ar = jnp.sum(memories * p["ar_mw"][None], axis=1) + p["ar_mb"][0]
    query = input_ar[:, None, :] @ p["wi"]
    key = memory_ar.reshape(-1, msteps, nf) @ p["wi"]
    proj = jnp.tanh(query + key + p["att_b"][0])
    sim = proj @ p["wc"].T + p["bc"][0]
    sim = jax.nn.softmax(sim, axis=1)
    context = jnp.squeeze(jnp.swapaxes(sim, 1, 2) @ key, axis=1)
    lin = jnp.concatenate([input_ar, context], axis=1)
    preds = jnp.tanh(lin @ p["wp"] + p["bp"][0])
    d = targets - preds
    loss = jnp.mean(d ** 2)
    rse = jnp.sqrt(jnp.sum(d ** 2)) / jnp.sqrt(jnp.sum((targets - jnp.mean(targets)) ** 2))
    smape = jnp.mean(2 * jnp.abs(d) / (jnp.abs(targets) + jnp.abs(preds)))
    mae = jnp.mean(jnp.abs(d))
    return preds, loss, rse, smape, mae


if __name__ == "__main__":
    key = jax.random.PRNGKey(0)
    k = jax.random.split(key, 8)

    params = {
        "ar_iw":  jax.random.normal(k[0], (X_LEN, NFEAT), jnp.float32),
        "ar_ib":  jnp.zeros((1, NFEAT), jnp.float32),
        "ar_mw":  jax.random.normal(k[1], (X_LEN + 1, NFEAT), jnp.float32),
        "ar_mb":  jnp.zeros((1, NFEAT), jnp.float32),
        "wi":     jax.random.normal(k[2], (NFEAT, ATT), jnp.float32) * 0.3,          # att_i (in,out)
        "att_b":  jnp.zeros((1, ATT), jnp.float32),
        "wc":     jax.random.normal(k[3], (1, ATT), jnp.float32) * 0.3,              # att_comb weight
        "bc":     jnp.zeros((1, 1), jnp.float32),                                    # att_comb bias
        "wp":     jax.random.normal(k[4], (NFEAT + ATT, NFEAT), jnp.float32) * 0.2,  # pred (in,out)
        "bp":     jnp.zeros((1, NFEAT), jnp.float32),
    }

    input_x = jax.random.normal(k[5], (BATCH, X_LEN, NFEAT), jnp.float32)
    mem = jax.random.normal(k[6], (BATCH, MSTEPS * (X_LEN + 1), NFEAT), jnp.float32)
    targets = jax.random.normal(k[7], (BATCH, NFEAT), jnp.float32)

    pack_params, forward = make_ar_mem(BATCH, X_LEN, MSTEPS, NFEAT, ATT)

    # Parameter slab built ONCE (outside the per-call path).
    slab = jax.block_until_ready(pack_params(params))

    preds, met = jax.block_until_ready(forward(input_x, mem, targets, slab))
    met_np = np.asarray(met)
    loss, rse, smape, mae = met_np[0, 0], met_np[0, 1], met_np[0, 2], met_np[0, 3]

    r_preds, r_loss, r_rse, r_smape, r_mae = reference_forward(input_x, mem, targets, params)
    np.testing.assert_allclose(np.asarray(preds), np.asarray(r_preds), rtol=1e-4, atol=1e-4)
    np.testing.assert_allclose(loss, np.asarray(r_loss), rtol=1e-4, atol=1e-4)
    np.testing.assert_allclose(rse, np.asarray(r_rse), rtol=1e-4, atol=1e-4)
    np.testing.assert_allclose(smape, np.asarray(r_smape), rtol=1e-4, atol=1e-4)
    np.testing.assert_allclose(mae, np.asarray(r_mae), rtol=1e-4, atol=1e-4)

    print("KERNEL_OK")
</pallas_src>

<mosaic_0001>
module attributes {stable_mosaic.version = 11 : i64} {
  func.func @_ar_mem_kernel(%arg0: memref<8x64xf32, #tpu.memory_space<vmem>>, %arg1: memref<32x72xf32, #tpu.memory_space<vmem>>, %arg2: memref<8x8xf32, #tpu.memory_space<vmem>>, %arg3: memref<272x32xf32, #tpu.memory_space<vmem>>, %arg4: memref<8x8xf32, #tpu.memory_space<vmem>>, %arg5: memref<1x4xf32, #tpu.memory_space<vmem>>) attributes {dimension_semantics = [], scalar_prefetch = 0 : i64, scratch_operands = 0 : i64, tpu.core_type = #tpu.core_type<tc>} {
    %c0 = arith.constant 0 : index
    %c0_0 = arith.constant 0 : index
    %0 = vector.load %arg3[%c0, %c0_0] : memref<272x32xf32, #tpu.memory_space<vmem>>, vector<64x8xf32>
    %c64 = arith.constant 64 : index
    %c0_1 = arith.constant 0 : index
    %1 = vector.load %arg3[%c64, %c0_1] : memref<272x32xf32, #tpu.memory_space<vmem>>, vector<72x8xf32>
    %c136 = arith.constant 136 : index
    %c0_2 = arith.constant 0 : index
    %2 = vector.load %arg3[%c136, %c0_2] : memref<272x32xf32, #tpu.memory_space<vmem>>, vector<24x8xf32>
    %c160 = arith.constant 160 : index
    %c0_3 = arith.constant 0 : index
    %3 = vector.load %arg3[%c160, %c0_3] : memref<272x32xf32, #tpu.memory_space<vmem>>, vector<8x16xf32>
    %c168 = arith.constant 168 : index
    %c0_4 = arith.constant 0 : index
    %4 = vector.load %arg3[%c168, %c0_4] : memref<272x32xf32, #tpu.memory_space<vmem>>, vector<32x8xf32>
    %c200 = arith.constant 200 : index
    %c0_5 = arith.constant 0 : index
    %5 = vector.load %arg3[%c200, %c0_5] : memref<272x32xf32, #tpu.memory_space<vmem>>, vector<8x32xf32>
    %c208 = arith.constant 208 : index
    %c0_6 = arith.constant 0 : index
    %6 = vector.load %arg3[%c208, %c0_6] : memref<272x32xf32, #tpu.memory_space<vmem>>, vector<16x1xf32>
    %c224 = arith.constant 224 : index
    %c0_7 = arith.constant 0 : index
    %7 = vector.load %arg3[%c224, %c0_7] : memref<272x32xf32, #tpu.memory_space<vmem>>, vector<40x5xf32>
    %c264 = arith.constant 264 : index
    %c0_8 = arith.constant 0 : index
    %8 = vector.load %arg3[%c264, %c0_8] : memref<272x32xf32, #tpu.memory_space<vmem>>, vector<1x8xf32>
    %c265 = arith.constant 265 : index
    %c0_9 = arith.constant 0 : index
    %9 = vector.load %arg3[%c265, %c0_9] : memref<272x32xf32, #tpu.memory_space<vmem>>, vector<1x8xf32>
    %c266 = arith.constant 266 : index
    %c0_10 = arith.constant 0 : index
    %10 = vector.load %arg3[%c266, %c0_10] : memref<272x32xf32, #tpu.memory_space<vmem>>, vector<1x8xf32>
    %c267 = arith.constant 267 : index
    %c0_11 = arith.constant 0 : index
    %11 = vector.load %arg3[%c267, %c0_11] : memref<272x32xf32, #tpu.memory_space<vmem>>, vector<1x16xf32>
    %c268 = arith.constant 268 : index
    %c0_12 = arith.constant 0 : index
    %12 = vector.load %arg3[%c268, %c0_12] : memref<272x32xf32, #tpu.memory_space<vmem>>, vector<1x1xf32>
    %c0_13 = arith.constant 0 : index
    %c0_14 = arith.constant 0 : index
    %13 = vector.load %arg0[%c0_13, %c0_14] : memref<8x64xf32, #tpu.memory_space<vmem>>, vector<8x64xf32>
    %cst = arith.constant dense<0.000000e+00> : vector<8x8xf32>
    %14 = tpu.matmul %13, %0, %cst {dimension_numbers = #tpu.dot_dimension_numbers<[1], [0], [0], [1], [0, 0, 1, 1], [], []>} : vector<8x64xf32>, vector<64x8xf32>, vector<8x8xf32> -> vector<8x8xf32>
    %15 = vector.broadcast %8 : vector<1x8xf32> to vector<8x8xf32>
    %16 = arith.addf %14, %15 : vector<8x8xf32>
    %c0_15 = arith.constant 0 : index
    %c0_16 = arith.constant 0 : index
    %17 = vector.load %arg1[%c0_15, %c0_16] : memref<32x72xf32, #tpu.memory_space<vmem>>, vector<32x72xf32>
    %cst_17 = arith.constant dense<0.000000e+00> : vector<32x8xf32>
    %18 = tpu.matmul %17, %1, %cst_17 {dimension_numbers = #tpu.dot_dimension_numbers<[1], [0], [0], [1], [0, 0, 1, 1], [], []>} : vector<32x72xf32>, vector<72x8xf32>, vector<32x8xf32> -> vector<32x8xf32>
    %19 = vector.broadcast %9 : vector<1x8xf32> to vector<32x8xf32>
    %20 = arith.addf %18, %19 : vector<32x8xf32>
    %cst_18 = arith.constant dense<0.000000e+00> : vector<8x16xf32>
    %21 = tpu.matmul %16, %3, %cst_18 {dimension_numbers = #tpu.dot_dimension_numbers<[1], [0], [0], [1], [0, 0, 1, 1], [], []>} : vector<8x8xf32>, vector<8x16xf32>, vector<8x16xf32> -> vector<8x16xf32>
    %cst_19 = arith.constant dense<0.000000e+00> : vector<32x16xf32>
    %22 = tpu.matmul %20, %3, %cst_19 {dimension_numbers = #tpu.dot_dimension_numbers<[1], [0], [0], [1], [0, 0, 1, 1], [], []>} : vector<32x8xf32>, vector<8x16xf32>, vector<32x16xf32> -> vector<32x16xf32>
    %cst_20 = arith.constant dense<0.000000e+00> : vector<32x16xf32>
    %23 = tpu.matmul %4, %21, %cst_20 {dimension_numbers = #tpu.dot_dimension_numbers<[1], [0], [0], [1], [0, 0, 1, 1], [], []>} : vector<32x8xf32>, vector<8x16xf32>, vector<32x16xf32> -> vector<32x16xf32>
    %24 = arith.addf %23, %22 : vector<32x16xf32>
    %25 = vector.broadcast %11 : vector<1x16xf32> to vector<32x16xf32>
    %26 = arith.addf %24, %25 : vector<32x16xf32>
    %27 = math.tanh %26 : vector<32x16xf32>
    %cst_21 = arith.constant dense<0.000000e+00> : vector<32x1xf32>
    %28 = tpu.matmul %27, %6, %cst_21 {dimension_numbers = #tpu.dot_dimension_numbers<[1], [0], [0], [1], [0, 0, 1, 1], [], []>} : vector<32x16xf32>, vector<16x1xf32>, vector<32x1xf32> -> vector<32x1xf32>
    %29 = vector.broadcast %12 : vector<1x1xf32> to vector<32x1xf32>
    %30 = arith.addf %28, %29 : vector<32x1xf32>
    %31 = vector.shape_cast %30 : vector<32x1xf32> to vector<1x32x1xf32>
    %cst_22 = arith.constant dense<0xFF800000> : vector<1xf32>
    %32 = vector.multi_reduction <maximumf>, %31, %cst_22 [1, 2] : vector<1x32x1xf32> to vector<1xf32>
    %33 = vector.shape_cast %32 : vector<1xf32> to vector<1x1x1xf32>
    %34 = vector.extract %33[0, 0, 0] : f32 from vector<1x1x1xf32>
    %35 = vector.broadcast %34 : f32 to vector<1x1xf32>
    %36 = vector.broadcast %35 : vector<1x1xf32> to vector<32x1xf32>
    %37 = arith.subf %30, %36 : vector<32x1xf32>
    %38 = math.exp %37 : vector<32x1xf32>
    %39 = vector.broadcast %38 : vector<32x1xf32> to vector<32x16xf32>
    %40 = arith.mulf %39, %22 : vector<32x16xf32>
    %41 = tpu.concatenate %40, %38 in 1 : vector<32x16xf32>, vector<32x1xf32> -> vector<32x17xf32>
    %cst_23 = arith.constant dense<0.000000e+00> : vector<8x17xf32>
    %42 = tpu.matmul %5, %41, %cst_23 {dimension_numbers = #tpu.dot_dimension_numbers<[1], [0], [0], [1], [0, 0, 1, 1], [], []>} : vector<8x32xf32>, vector<32x17xf32>, vector<8x17xf32> -> vector<8x17xf32>
    %43 = vector.extract_strided_slice %42 {offsets = [0, 0], sizes = [8, 16], strides = [1, 1]} : vector<8x17xf32> to vector<8x16xf32>
    %44 = vector.extract_strided_slice %42 {offsets = [0, 16], sizes = [8, 1], strides = [1, 1]} : vector<8x17xf32> to vector<8x1xf32>
    %45 = tpu.reciprocal %44 : vector<8x1xf32> -> vector<8x1xf32>
    %46 = vector.broadcast %45 : vector<8x1xf32> to vector<8x16xf32>
    %47 = arith.mulf %43, %46 : vector<8x16xf32>
    %48 = tpu.concatenate %16, %47 in 1 : vector<8x8xf32>, vector<8x16xf32> -> vector<8x24xf32>
    %cst_24 = arith.constant dense<0.000000e+00> : vector<8x8xf32>
    %49 = tpu.matmul %48, %2, %cst_24 {dimension_numbers = #tpu.dot_dimension_numbers<[1], [0], [0], [1], [0, 0, 1, 1], [], []>} : vector<8x24xf32>, vector<24x8xf32>, vector<8x8xf32> -> vector<8x8xf32>
    %50 = vector.broadcast %10 : vector<1x8xf32> to vector<8x8xf32>
    %51 = arith.addf %49, %50 : vector<8x8xf32>
    %52 = math.tanh %51 : vector<8x8xf32>
    %c0_25 = arith.constant 0 : index
    %c0_26 = arith.constant 0 : index
    %53 = vector.load %arg4[%c0_25, %c0_26] : memref<8x8xf32, #tpu.memory_space<vmem>>, vector<8x8xf32>
    tpu.vector_store %arg4[%c0_25, %c0_26], %52 {strides = array<i32>} : memref<8x8xf32, #tpu.memory_space<vmem>>, vector<8x8xf32>,
    %c0_27 = arith.constant 0 : index
    %c0_28 = arith.constant 0 : index
    %54 = vector.load %arg2[%c0_27, %c0_28] : memref<8x8xf32, #tpu.memory_space<vmem>>, vector<8x8xf32>
    %55 = arith.subf %54, %52 : vector<8x8xf32>
    %56 = math.absf %55 : vector<8x8xf32>
    %57 = arith.mulf %55, %55 : vector<8x8xf32>
    %cst_29 = arith.constant 2.000000e+00 : f32
    %58 = vector.broadcast %cst_29 : f32 to vector<8x8xf32>
    %59 = arith.mulf %58, %56 : vector<8x8xf32>
    %60 = math.absf %54 : vector<8x8xf32>
    %61 = math.absf %52 : vector<8x8xf32>
    %62 = arith.addf %60, %61 : vector<8x8xf32>
    %63 = arith.divf %59, %62 : vector<8x8xf32>
    %64 = arith.mulf %54, %54 : vector<8x8xf32>
    %65 = tpu.concatenate %57, %56, %63, %54, %64 in 1 : vector<8x8xf32>, vector<8x8xf32>, vector<8x8xf32>, vector<8x8xf32>, vector<8x8xf32> -> vector<8x40xf32>
    %cst_30 = arith.constant dense<0.000000e+00> : vector<8x5xf32>
    %66 = tpu.matmul %65, %7, %cst_30 {dimension_numbers = #tpu.dot_dimension_numbers<[1], [0], [0], [1], [0, 0, 1, 1], [], []>} : vector<8x40xf32>, vector<40x5xf32>, vector<8x5xf32> -> vector<8x5xf32>
    %cst_31 = arith.constant dense<0.000000e+00> : vector<5xf32>
    %67 = vector.multi_reduction <add>, %66, %cst_31 [0] : vector<8x5xf32> to vector<5xf32>
    %68 = vector.shape_cast %67 : vector<5xf32> to vector<1x5xf32>
    %69 = vector.extract_strided_slice %68 {offsets = [0, 0], sizes = [1, 1], strides = [1, 1]} : vector<1x5xf32> to vector<1x1xf32>
    %70 = vector.extract_strided_slice %68 {offsets = [0, 1], sizes = [1, 1], strides = [1, 1]} : vector<1x5xf32> to vector<1x1xf32>
    %71 = vector.extract_strided_slice %68 {offsets = [0, 2], sizes = [1, 1], strides = [1, 1]} : vector<1x5xf32> to vector<1x1xf32>
    %72 = vector.extract_strided_slice %68 {offsets = [0, 3], sizes = [1, 1], strides = [1, 1]} : vector<1x5xf32> to vector<1x1xf32>
    %73 = vector.extract_strided_slice %68 {offsets = [0, 4], sizes = [1, 1], strides = [1, 1]} : vector<1x5xf32> to vector<1x1xf32>
    %74 = math.sqrt %69 : vector<1x1xf32>
    %75 = arith.mulf %72, %72 : vector<1x1xf32>
    %cst_32 = arith.constant 1.562500e-02 : f32
    %76 = vector.broadcast %cst_32 : f32 to vector<1x1xf32>
    %77 = arith.mulf %75, %76 : vector<1x1xf32>
    %78 = arith.subf %73, %77 : vector<1x1xf32>
    %79 = math.rsqrt %78 : vector<1x1xf32>
    %80 = arith.mulf %74, %79 : vector<1x1xf32>
    %cst_33 = arith.constant 1.562500e-02 : f32
    %81 = vector.broadcast %cst_33 : f32 to vector<1x1xf32>
    %82 = arith.mulf %69, %81 : vector<1x1xf32>
    %cst_34 = arith.constant 1.562500e-02 : f32
    %83 = vector.broadcast %cst_34 : f32 to vector<1x1xf32>
    %84 = arith.mulf %71, %83 : vector<1x1xf32>
    %cst_35 = arith.constant 1.562500e-02 : f32
    %85 = vector.broadcast %cst_35 : f32 to vector<1x1xf32>
    %86 = arith.mulf %70, %85 : vector<1x1xf32>
    %87 = tpu.concatenate %82, %80, %84, %86 in 1 : vector<1x1xf32>, vector<1x1xf32>, vector<1x1xf32>, vector<1x1xf32> -> vector<1x4xf32>
    %c0_36 = arith.constant 0 : index
    %c0_37 = arith.constant 0 : index
    %88 = vector.load %arg5[%c0_36, %c0_37] : memref<1x4xf32, #tpu.memory_space<vmem>>, vector<1x4xf32>
    tpu.vector_store %arg5[%c0_36, %c0_37], %87 {strides = array<i32>} : memref<1x4xf32, #tpu.memory_space<vmem>>, vector<1x4xf32>,
    return
  }
}

</mosaic_0001>

<bundles_post_ra>
// kernel: forward.1
= control target key start
LH: loop header
LB: loop body
LE: loop exit
PB: predicated region body
PF: predicated region fallthrough
CT: control target
= control target key end

     0   :  { %11 = vsyncpa [#allocation3], 0  ;;  %v1316_v1 = vmov 0.0   ;;  %vm1317_vm0 = vmmov 0   ;;  %s1589_s0 = inlined_call_operand.vmem [shape: f32[8,64], index: 0, kind: input, shape index: {}]   ;;  %s1590_s1 = inlined_call_operand.vmem [shape: f32[32,72], index: 1, kind: input, shape index: {}]   ;;  %s1591_s2 = inlined_call_operand.vmem [shape: f32[8,8], index: 2, kind: input, shape index: {}]   ;;  %s1592_s3 = inlined_call_operand.vmem [shape: f32[272,32], index: 3, kind: input, shape index: {}]   ;;  %s1593_s4 = inlined_call_operand.hbm [shape: f32[8,8], index: 4, kind: output, shape index: {0}]   ;;  %s1594_s5 = inlined_call_operand.hbm [shape: f32[1,4], index: 5, kind: output, shape index: {1}]  }
   0x1   :  { %v28_v0 = vld [vmem:[%s1592_s3 + $0x38] sm:$0xff]  ;;  %1120 = vmatprep.subr.mxu0 %v1316_v1  ;;  %v27_v2 = vld [vmem:[%s1592_s3 + $0x30] sm:$0xff]  ;;  %1136 = vmatprep.mubr.msk.f32.mxu0 %vm1317_vm0, %v1316_v1  ;;  %v26_v3 = vld [vmem:[%s1592_s3 + $0x28] sm:$0xff] }
   0x2   :  { %1121 = vmatpush3.msra.mxu0 %v28_v0  ;;  %v37_v4 = vld [vmem:[%s1592_s3 + $0x80] sm:$0xff]  ;;  %v36_v5 = vld [vmem:[%s1592_s3 + $0x78] sm:$0xff]  ;;  %v35_v7 = vld [vmem:[%s1592_s3 + $0x70] sm:$0xff] }
   0x3   :  { %1122 = vmatprep.subr.mxu0 %v1316_v1  ;;  %1139 = vmatprep.subr.mxu1 %v37_v4  ;;  %v25_v6 = vld [vmem:[%s1592_s3 + $0x20] sm:$0xff] }
   0x4   :  { %1123 = vmatpush3.msra.mxu0 %v27_v2  ;;  %1140 = vmatpush3.msra.mxu1 %v37_v4 }
   0x5   :  { %1124 = vmatprep.subr.mxu0 %v1316_v1  ;;  %1141 = vmatprep.subr.mxu1 %v36_v5 }
   0x6   :  { %1125 = vmatpush3.msra.mxu0 %v26_v3 }
   0x7   :  { %12 = vsyncpa [#allocation5], 0  ;;  %1126 = vmatprep.subr.mxu0 %v1316_v1  ;;  %v24_v8 = vld [vmem:[%s1592_s3 + $0x18] sm:$0xff]  ;;  %1142 = vmatpush3.msra.mxu1 %v36_v5  ;;  %v34_v9 = vld [vmem:[%s1592_s3 + $0x68] sm:$0xff]  ;;  %vm64_vm1 = vcmask 523264   ;;  %vm146_vm2 = vcmask 588800  }
   0x8   :  { %1127 = vmatpush3.msra.mxu0 %v25_v6  ;;  %1143 = vmatprep.subr.mxu1 %v35_v7  ;;  %v23_v10 = vld [vmem:[%s1592_s3 + $0x10] sm:$0xff]  ;;  %v33_v11 = vld [vmem:[%s1592_s3 + $0x60] sm:$0xff]  ;;  %v22_v12 = vld [vmem:[%s1592_s3 + $0x8] sm:$0xff]  ;;  %vm244_vm3 = vcmask 64512   ;;  %vm528_vm4 = vcmask 130048   ;;  %vm626_vm5 = vcmask 7168  }
   0x9   :  { %1128 = vmatprep.subr.mxu0 %v1316_v1  ;;  %1144 = vmatpush3.msra.mxu1 %v35_v7  ;;  %v32_v13 = vld [vmem:[%s1592_s3 + $0x58] sm:$0xff]  ;;  %v21_v14 = vld [vmem:[%s1592_s3] sm:$0xff]  ;;  %v31_v15 = vld [vmem:[%s1592_s3 + $0x50] sm:$0xff]  ;;  %s1319_s7 = smov 16   ;;  %vm696_vm6 = vcmask 261120   ;;  %s1321_s15 = smov 8  }
   0xa   :  { %1129 = vmatpush3.msra.mxu0 %v24_v8  ;;  %1145 = vmatprep.subr.mxu1 %v34_v9  ;;  %v59_v16 = vld [vmem:[%s1589_s0] sm:$0xff]  ;;  %v30_v17 = vld [vmem:[%s1592_s3 + $0x48] sm:$0xff]  ;;  %v140_v21 = vld [vmem:[%s1590_s1 + $0x10] sm:$0xff]  ;;  %vm786_vm7 = vcmask 195584   ;;  %s1322_s18 = smov 32   ;;  %s1323_s0 = smov 24  }
   0xb   :  { %1130 = vmatprep.subr.mxu0 %v1316_v1  ;;  %1146 = vmatpush3.msra.mxu1 %v34_v9  ;;  %v138_v18 = vld [vmem:[%s1590_s1] sm:$0xff]  ;;  %v139_v20 = vld [vmem:[%s1590_s1 + $0x8] sm:$0xff]  ;;  %v141_v22 = vld [vmem:[%s1590_s1 + $0x18] sm:$0xff]  ;;  %vm893_vm8 = vcmask 326656   ;;  %vm967_vm9 = vcmask 39936   ;;  %s1325_s30 = smov 124  }
   0xc   :  { %1131 = vmatpush3.msra.mxu0 %v23_v10  ;;  %1147 = vmatprep.subr.mxu1 %v33_v11  ;;  %v29_v19 = vld [vmem:[%s1592_s3 + $0x40] sm:$0xff]  ;;  %v1039_v24 = vld [vmem:[%s1592_s3 + $0x108] ss:$0 sm:$0xff]  ;;  %v1041_v28 = vld [vmem:[%s1592_s3 + $0x109] ss:$0 sm:$0xff] }
   0xd   :  { %1132 = vmatprep.subr.mxu0 %v1316_v1  ;;  %1148 = vmatpush3.msra.mxu1 %v33_v11  ;;  %v41_v23 = vld [vmem:[%s1592_s3 + $0xa0] sm:$0xff]  ;;  %v42_v37 = vld [vmem:[%s1592_s3 + $0xa8] sm:$0xff]  ;;  %v43_v39 = vld [vmem:[%s1592_s3 + $0xb0] sm:$0xff] }
   0xe   :  { %1133 = vmatpush3.msra.mxu0 %v22_v12  ;;  %1149 = vmatprep.subr.mxu1 %v32_v13  ;;  %v44_v40 = vld [vmem:[%s1592_s3 + $0xb8] sm:$0xff]  ;;  %v45_v42 = vld [vmem:[%s1592_s3 + $0xc0] sm:$0xff]  ;;  %v47_v44 = vld [vmem:[%s1592_s3 + $0xd0] sm:$0xff] }
   0xf   :  { %1134 = vmatprep.subr.mxu0 %v1316_v1  ;;  %1150 = vmatpush3.msra.mxu1 %v32_v13  ;;  %v48_v43 = vld [vmem:[%s1592_s3 + $0xd8] sm:$0xff]  ;;  %v1055_v48 = vld [vmem:[%s1592_s3 + $0x10b] ss:$0 sm:$0xff]  ;;  %v1056_v4 = vld [vmem:[%s1592_s3 + $0x10c] ss:$0 sm:$0xff] }
  0x10   :  { %1135 = vmatpush3.msra.mxu0 %v21_v14  ;;  %1151 = vmatprep.subr.mxu1 %v31_v15 }
  0x11   :  { %1137 = vmatmul.mubr.msk.f32.vlgmr.msra.gmra.mxu0 %vm64_vm1, %v59_v16  ;;  %1152 = vmatpush3.msra.mxu1 %v31_v15 }
  0x12   :  { %1153 = vmatprep.subr.mxu1 %v30_v17  ;;  %1157 = vmatprep.mubr.msk.f32.mxu1 %vm146_vm2, %v138_v18 }
  0x13   :  { %1154 = vmatpush3.msra.mxu1 %v30_v17  ;;  %1163 = vmatprep.subr.mxu0 %v1316_v1 }
  0x14   :  { %1155 = vmatprep.subr.mxu1 %v29_v19  ;;  %1165 = vmatprep.mubr.msk.f32.mxu0 %vm1317_vm0, %v1316_v1 }
  0x15   :  { %1156 = vmatpush3.msra.mxu1 %v29_v19  ;;  %1164 = vmatpush3.msra.mxu0 %v41_v23  ;;  %v1318_v19 = vmov 0  }
  0x16   :  { %1158 = vmatmul.mubr.msk.f32.vlgmr.msra.gmra.mxu1 %vm146_vm2, %v139_v20  ;;  %1168 = vmatprep.subr.mxu0 %v41_v23 }
  0x17   :  { %1160 = vmatprep.mubr.msk.f32.mxu1 %vm146_vm2, %v140_v21  ;;  %1243 = vset.pattern.permute.xlu1 %v1318_v19 }
  0x18   :  { %1242 = vset.pattern.permute.xlu0 %v1318_v19  ;;  %v51_v19 = vld [vmem:[%s1592_s3 + $0xf0] sm:$0xff] }
  0x1a   :  { %1161 = vmatmul.mubr.msk.f32.gmra.mxu1 %vm146_vm2, %v141_v22 }
  0x1b   :  { %1178 = vmatprep.mubr.msk.f32.mxu1 %vm244_vm3, %v42_v37 }
  0xd1   :  { %v134_v25 = vpop.f32.mrf.mxu0 }
  0xd2   :  { %v1448_v26 = vadd.f32 %v1039_v24, %v134_v25 }
  0xd3   :  { %v1138_v27 = vpop.f32.mrf.mxu0 }
  0xd4   :  { %1166 = vmatmul.mubr.msk.f32.vlgmr.msra.gmra.mxu0 %vm244_vm3, %v1448_v26 }
  0xd5   :  { %1169 = vmatpush3.msra.mxu0 %v41_v23 }
  0xd6   :  { %v1159_v29 = vpop.f32.mrf.mxu1  ;;  %1184 = vmatprep.subr.mxu0 %v48_v43 }
  0xd7   :  { %v231_v30 = vadd.f32 %v1159_v29, %v1041_v28 }
  0xd8   :  { %v225_v31 = vpop.f32.mrf.mxu1 }
  0xd9   :  { %v226_v32 = vadd.f32 %v1041_v28, %v225_v31 }
  0xda   :  { %v1162_v33 = vpop.f32.mrf.mxu1 }
  0xdb   :  { %1170 = vmatprep.mubr.msk.f32.mxu0 %vm244_vm3, %v226_v32  ;;  %v241_v36 = vadd.f32 %v1162_v33, %v1041_v28 }
  0xdc   :  { %v235_v34 = vpop.f32.mrf.mxu1  ;;  %1171 = vmatmul.mubr.msk.f32.vlgmr.msra.gmra.mxu0 %vm244_vm3, %v231_v30 }
  0xdd   :  { %v236_v35 = vadd.f32 %v1041_v28, %v235_v34  ;;  %1185 = vmatpush3.msra.mxu0 %v48_v43 }
  0xde   :  { %1186 = vmatprep.subr.mxu0 %v47_v44 }
  0xdf   :  { %1173 = vmatprep.mubr.msk.f32.mxu0 %vm244_vm3, %v236_v35  ;;  %1187 = vmatpush3.msra.mxu0 %v47_v44 }
  0xe0   :  { %1174 = vmatmul.mubr.msk.f32.gmra.mxu0 %vm244_vm3, %v241_v36  ;;  %1205 = vmatprep.subr.mxu0 %v1316_v1 }
 0x194   :  { %v314_v38 = vpop.f32.mrf.mxu0 }
 0x195   :  { %1176 = vmatprep.subr.mxu1 %v314_v38 }
 0x196   :  { %v1167_v41 = vpop.f32.mrf.mxu0  ;;  %1177 = vmatpush3.msra.mxu1 %v314_v38 }
 0x197   :  { %1179 = vmatmul.mubr.msk.f32.vlgmr.msra.gmra.mxu1 %vm244_vm3, %v43_v39  ;;  %1194 = vmatprep.subr.mxu1 %v1316_v1 }
 0x198   :  { %1181 = vmatprep.mubr.msk.f32.mxu1 %vm244_vm3, %v44_v40 }
 0x19b   :  { %1182 = vmatmul.mubr.msk.f32.gmra.mxu1 %vm244_vm3, %v45_v42 }
 0x19c   :  { %1202 = vmatprep.mubr.msk.f32.mxu1 %vm1317_vm0, %v1316_v1  ;;  %v1485_v45 = vpop.f32.mrf.mxu0 }
 0x19e   :  { %v1487_v46 = vpop.f32.mrf.mxu0 }
 0x1a0   :  { %v1493_v51 = vpop.f32.mrf.mxu0 }
 0x1a2   :  { %v1497_v57 = vpop.f32.mrf.mxu0 }
 0x257   :  { %v1180_v47 = vpop.f32.mrf.mxu1 }
 0x258   :  { %v499_v49 = vadd.f32 %v1180_v47, %v1485_v45 }
 0x259   :  { %v493_v50 = vpop.f32.mrf.mxu1 }
 0x25a   :  { %v494_v52 = vadd.f32 %v493_v50, %v1487_v46  ;;  %v517_v53 = vadd.f32 %v1055_v48, %v499_v49 }
 0x25b   :  { %v1183_v54 = vpop.f32.mrf.mxu1 }
 0x25c   :  { %v516_v55 = vadd.f32 %v1055_v48, %v494_v52  ;;  %v509_v56 = vadd.f32 %v1183_v54, %v1493_v51 }
 0x25d   :  { %v503_v58 = vpop.f32.mrf.mxu1 }
 0x25e   :  { %1246 = vtanh.f32 %v516_v55  ;;  %v504_v59 = vadd.f32 %v503_v58, %v1497_v57  ;;  %v519_v60 = vadd.f32 %v1055_v48, %v509_v56 }
 0x25f   :  { %1248 = vtanh.f32 %v517_v53 }
 0x260   :  { %v518_v61 = vadd.f32 %v1055_v48, %v504_v59 }
 0x262   :  { %1250 = vtanh.f32 %v518_v61  ;;  %v40_v61 = vld [vmem:[%s1592_s3 + $0x98] sm:$0xff] }
 0x263   :  { %1252 = vtanh.f32 %v519_v60 }
 0x26b   :  { %v1247_v62 = vpop.eup %1246 }
 0x26c   :  { %v1249_v63 = vpop.eup %1248  ;;  %1188 = vmatprep.mubr.msk.f32.mxu0 %vm528_vm4, %v1247_v62  ;;  %v39_v62 = vld [vmem:[%s1592_s3 + $0x90] sm:$0xff] }
 0x26d   :  { %1189 = vmatmul.mubr.msk.f32.vlgmr.msra.gmra.mxu0 %vm528_vm4, %v1249_v63 }
 0x26e   :  { %1206 = vmatpush3.msra.mxu0 %v40_v61 }
 0x26f   :  { %v1251_v0 = vpop.eup %1250  ;;  %1207 = vmatprep.subr.mxu0 %v1316_v1 }
 0x270   :  { %v1253_v2 = vpop.eup %1252  ;;  %1191 = vmatprep.mubr.msk.f32.mxu0 %vm528_vm4, %v1251_v0  ;;  %1208 = vmatpush3.msra.mxu0 %v39_v62  ;;  %v38_v0 = vld [vmem:[%s1592_s3 + $0x88] sm:$0xff] }
 0x271   :  { %1192 = vmatmul.mubr.msk.f32.gmra.mxu0 %vm528_vm4, %v1253_v2  ;;  %1209 = vmatprep.subr.mxu0 %v1316_v1 }
 0x272   :  { %1211 = vmatprep.mubr.msk.f32.mxu0 %vm1317_vm0, %v1316_v1  ;;  %1210 = vmatpush3.msra.mxu0 %v38_v0 }
 0x32d   :  { %v1190_v3 = vpop.f32.mrf.mxu0 }
 0x32e   :  { %v613_v8 = vadd.f32 %v1190_v3, %v1056_v4 }
 0x32f   :  { %v607_v5 = vpop.f32.mrf.mxu0 }
 0x330   :  { %v608_v6 = vadd.f32 %v1056_v4, %v607_v5  ;;  %v628_v13 = vsel %vm626_vm5, %v613_v8, -inf }
 0x331   :  { %v1193_v7 = vpop.f32.mrf.mxu0 }
 0x332   :  { %v623_v9 = vadd.f32 %v1193_v7, %v1056_v4  ;;  %v627_v11 = vsel %vm626_vm5, %v608_v6, -inf }
 0x333   :  { %v617_v10 = vpop.f32.mrf.mxu0  ;;  %v631_v16 = vmax.f32 %v627_v11, %v628_v13 }
 0x334   :  { %v618_v12 = vadd.f32 %v1056_v4, %v617_v10  ;;  %v630_v14 = vsel %vm626_vm5, %v623_v9, -inf }
 0x336   :  { %v629_v15 = vsel %vm626_vm5, %v618_v12, -inf }
 0x337   :  { %v632_v17 = vmax.f32 %v629_v15, %v630_v14 }
 0x339   :  { %v633_v18 = vmax.f32 %v631_v16, %v632_v17 }
 0x33b   :  { %634 = vmax.xlane.f32.xlu0 %v633_v18 }
 0x3c4   :  { %v635_v20 = vpop.xlane.xlu0 %634 }
 0x3c5   :  { %v636_v21 = vrot.slane %v635_v20, 4 }
 0x3c7   :  { %v637_v22 = vmax.f32 %v635_v20, %v636_v21  ;;  %v50_v20 = vld [vmem:[%s1592_s3 + $0xe8] sm:$0xff]  ;;  %v49_v21 = vld [vmem:[%s1592_s3 + $0xe0] sm:$0xff] }
 0x3c9   :  { %v638_v23 = vrot.slane %v637_v22, 2 }
 0x3cb   :  { %v639_v24 = vmax.f32 %v637_v22, %v638_v23 }
 0x3cd   :  { %v640_v25 = vrot.slane %v639_v24, 1 }
 0x3cf   :  { %v641_v27 = vmax.f32 %v639_v24, %v640_v25 }
 0x3d1   :  { %1227 = vpush %v641_v27 }
 0x402   :  { %s1228_s6 = spop %1227 }
 0x403   :  { %v643_v28 = vstv %s1228_s6  ;;  %s1326_s6 = smov 2  }
 0x404   :  { %v646_v29 = vsub.f32 %v618_v12, %v643_v28  ;;  %v647_v30 = vsub.f32 %v623_v9, %v643_v28  ;;  %v645_v31 = vsub.f32 %v613_v8, %v643_v28  ;;  %v644_v34 = vsub.f32 %v608_v6, %v643_v28  ;;  %v862_v6 = vld [vmem:[%s1591_s2] sm:$0xff]  ;;  %v1062_v8 = vld [vmem:[%s1592_s3 + $0x10a] ss:$0 sm:$0xff]  ;;  %v52_v12 = vld [vmem:[%s1592_s3 + $0xf8] sm:$0xff] }
 0x405   :  { %v872_v7 = vmul.f32 %v862_v6, %v862_v6  ;;  %v867_v13 = vand.u32 2147483647, %v862_v6 }
 0x406   :  { %v652_v32 = vmul.f32 1.442695, %v646_v29  ;;  %v654_v33 = vmul.f32 1.442695, %v647_v30  ;;  %v650_v35 = vmul.f32 1.442695, %v645_v31 }
 0x407   :  { %v648_v36 = vmul.f32 1.442695, %v644_v34 }
 0x408   :  { %1254 = vpow2.f32 %v652_v32 }
 0x409   :  { %1256 = vpow2.f32 %v654_v33 }
 0x40a   :  { %1258 = vpow2.f32 %v650_v35 }
 0x40b   :  { %1260 = vpow2.f32 %v648_v36 }
 0x415   :  { %v1255_v37 = vpop.eup %1254 }
 0x416   :  { %v1257_v38 = vpop.eup %1256  ;;  %668 = vperm.xlu1 %1243, %v1255_v37  }
 0x417   :  { %673 = vperm.xlu0 %1242, %v1257_v38   ;;  %v1259_v39 = vpop.eup %1258 }
 0x418   :  { %v1261_v40 = vpop.eup %1260 }
 0x41a   :  { %663 = vperm.xlu1 %1243, %v1259_v39  }
 0x41b   :  { %886 = vrot.lane.b32.xlu0 %v872_v7, %s1322_s18 }
 0x41e   :  { %658 = vperm.xlu1 %1243, %v1261_v40  }
 0x422   :  { %686 = vrot.lane.b32.xlu1 %v1257_v38, %s1319_s7 }
 0x426   :  { %684 = vrot.lane.b32.xlu1 %v1255_v37, %s1319_s7 }
 0x42a   :  { %682 = vrot.lane.b32.xlu1 %v1259_v39, %s1319_s7 }
 0x42e   :  { %680 = vrot.lane.b32.xlu1 %v1261_v40, %s1319_s7 }
 0x491   :  { %v669_v41 = vpop.permute.xlu1 %668 }
 0x492   :  { %v674_v43 = vpop.permute.xlu0 %673  ;;  %v678_v50 = vmul.f32 %v669_v41, %v1497_v57  ;;  %v46_v57 = vld [vmem:[%s1592_s3 + $0xc8] sm:$0xff] }
 0x493   :  { %v679_v47 = vmul.f32 %v1493_v51, %v674_v43 }
 0x495   :  { %v664_v42 = vpop.permute.xlu1 %663 }
 0x496   :  { %v677_v54 = vmul.f32 %v1485_v45, %v664_v42  ;;  %v1320_v45 = vmov 16   ;;  %v887_v30 = vpop.permute.xlu0 %886 }
 0x497   :  { %1244 = vset.pattern.permute.xlu1 %v1320_v45  ;;  %1245 = vset.pattern.permute.xlu0 %v1320_v45 }
 0x499   :  { %v659_v44 = vpop.permute.xlu1 %658 }
 0x49a   :  { %v676_v51 = vmul.f32 %v659_v44, %v1487_v46 }
 0x49d   :  { %v687_v48 = vpop.permute.xlu1 %686 }
 0x49e   :  { %v695_v49 = vsel %vm528_vm4, %v679_v47, %v687_v48 }
 0x49f   :  { %1195 = vmatpush3.msra.mxu1 %v695_v49 }
 0x4a0   :  { %1196 = vmatprep.subr.mxu1 %v1316_v1 }
 0x4a1   :  { %v685_v52 = vpop.permute.xlu1 %684 }
 0x4a2   :  { %v694_v53 = vsel %vm528_vm4, %v678_v50, %v685_v52 }
 0x4a3   :  { %1197 = vmatpush3.msra.mxu1 %v694_v53 }
 0x4a4   :  { %1198 = vmatprep.subr.mxu1 %v1316_v1 }
 0x4a5   :  { %v683_v55 = vpop.permute.xlu1 %682 }
 0x4a6   :  { %v693_v56 = vsel %vm528_vm4, %v677_v54, %v683_v55 }
 0x4a7   :  { %1199 = vmatpush3.msra.mxu1 %v693_v56 }
 0x4a8   :  { %1200 = vmatprep.subr.mxu1 %v1316_v1 }
 0x4a9   :  { %v681_v58 = vpop.permute.xlu1 %680 }
 0x4aa   :  { %v692_v59 = vsel %vm528_vm4, %v676_v51, %v681_v58 }
 0x4ab   :  { %1201 = vmatpush3.msra.mxu1 %v692_v59 }
 0x4ac   :  { %1203 = vmatmul.mubr.msk.f32.vlgmr.msra.gmra.mxu1 %vm696_vm6, %v46_v57  ;;  %1214 = vmatprep.subr.mxu1 %v1316_v1 }
 0x4ad   :  { %1224 = vmatprep.mubr.msk.f32.mxu1 %vm1317_vm0, %v1316_v1 }
 0x56c   :  { %v766_v46 = vpop.f32.mrf.mxu1 }
 0x56d   :  { %1262 = vrcp.f32 %v766_v46 }
 0x56e   :  { %v1204_v60 = vpop.f32.mrf.mxu1 }
 0x57a   :  { %v1263_v63 = vpop.eup %1262 }
 0x57b   :  { %773 = vperm.xlu1 %1244, %v1263_v63  }
 0x5f6   :  { %v774_v2 = vpop.permute.xlu1 %773 }
 0x5f7   :  { %v776_v3 = vmul.f32 %v774_v2, %v766_v46 }
 0x5f9   :  { %778 = vrot.lane.b32.xlu1 %v776_v3, %s1321_s15 }
 0x66b   :  { %v779_v4 = vpop.permute.xlu1 %778 }
 0x66c   :  { %v781_v5 = vsel %vm244_vm3, %v1448_v26, %v779_v4  ;;  %v53_v26 = vld [vmem:[%s1592_s3 + $0x100] sm:$0xff]  ;;  %s1324_s3 = smov 1  }
 0x66d   :  { %1212 = vmatmul.mubr.msk.f32.vlgmr.msra.gmra.mxu0 %vm786_vm7, %v781_v5  ;;  %1215 = vmatpush3.msra.mxu1 %v53_v26 }
 0x66e   :  { %1216 = vmatprep.subr.mxu1 %v1316_v1 }
 0x66f   :  { %1217 = vmatpush3.msra.mxu1 %v52_v12 }
 0x670   :  { %1218 = vmatprep.subr.mxu1 %v1316_v1 }
 0x671   :  { %1219 = vmatpush3.msra.mxu1 %v51_v19 }
 0x672   :  { %1220 = vmatprep.subr.mxu1 %v1316_v1 }
 0x673   :  { %1221 = vmatpush3.msra.mxu1 %v50_v20 }
 0x674   :  { %1222 = vmatprep.subr.mxu1 %v1316_v1 }
 0x675   :  { %1223 = vmatpush3.msra.mxu1 %v49_v21 }
 0x72d   :  { %v856_v9 = vpop.f32.mrf.mxu0 }
 0x72e   :  { %v857_v10 = vadd.f32 %v1062_v8, %v856_v9 }
 0x72f   :  { %v1213_v11 = vpop.f32.mrf.mxu0 }
 0x730   :  { %1264 = vtanh.f32 %v857_v10 }
 0x73d   :  { %v1265_v14 = vpop.eup %1264 }
 0x73e   :  { %861 = vst.msk [vmem:[#allocation2] sm:$0xff] %vm244_vm3, %v1265_v14  ;;  %v863_v15 = vsub.f32 %v862_v6, %v1265_v14  ;;  %v868_v16 = vand.u32 2147483647, %v1265_v14 }
 0x740   :  { %v864_v17 = vand.u32 2147483647, %v863_v15  ;;  %v869_v18 = vadd.f32 %v868_v16, %v867_v13  ;;  %v865_v28 = vmul.f32 %v863_v15, %v863_v15 }
 0x742   :  { %1266 = vrcp.f32 %v869_v18  ;;  %874 = vrot.lane.b32.xlu1 %v864_v17, %s1321_s15  ;;  %v866_v22 = vmul.f32 2.0, %v864_v17 }
 0x74f   :  { %v1267_v23 = vpop.eup %1266 }
 0x750   :  { %v871_v24 = vmul.f32 %v1267_v23, %v866_v22 }
 0x752   :  { %878 = vrot.lane.b32.xlu1 %v871_v24, %s1319_s7  ;;  %s1327_s7 = smov [#allocation2]  }
 0x753   :  { %s1017_s8 = sshll.u32 %s1327_s7, 4  ;;  %s1018_s8 = int_to_ptr.vmem [resolvable:$true] %s1017_s8 }
 0x754   :  { %s1272_s9 = scalar_lea.vmem %s1018_s8, 128  ;;  %p1277_p1 = scmp.lt.s32.totalorder %s1018_s8, %s1018_s8 }
 0x755   :  { %p1273_p0 = scmp.ne.s32.totalorder %s1018_s8, %s1272_s9  ;;  %p1278_p2 = scmp.lt.s32.totalorder %s1272_s9, %s1272_s9 }
 0x756   :  { %882 = vrot.lane.b32.xlu1 %v862_v6, %s1323_s0 }
 0x757   :  { %p1279_p3 = por %p1278_p2, %p1277_p1 }
 0x759   :  { %p1280_p4 = pnand %p1279_p3, %p1273_p0 }
 0x7b4   :  { %v875_v25 = vpop.permute.xlu1 %874 }
 0x7b5   :  { %v889_v29 = vsel %vm244_vm3, %v865_v28, %v875_v25 }
 0x7c4   :  { %v879_v27 = vpop.permute.xlu1 %878 }
 0x7c5   :  { %v890_v1 = vsel %vm528_vm4, %v889_v29, %v879_v27 }
 0x7c8   :  { %v883_v31 = vpop.permute.xlu1 %882 }
 0x7c9   :  { %v891_v32 = vsel %vm786_vm7, %v890_v1, %v883_v31 }
 0x7ca   :  { %v892_v33 = vsel %vm696_vm6, %v891_v32, %v887_v30 }
 0x7cb   :  { %1225 = vmatmul.mubr.msk.f32.vlgmr.msra.gmra.mxu1 %vm893_vm8, %v892_v33 }
 0x88b   :  { %v963_v34 = vpop.f32.mrf.mxu1 }
 0x88c   :  { %v968_v35 = vsel %vm967_vm9, %v963_v34, 0.0 }
 0x88d   :  { %v969_v36 = vrot.slane %v968_v35, 4  ;;  %v1226_v37 = vpop.f32.mrf.mxu1 }
 0x88f   :  { %v970_v38 = vadd.f32 %v969_v36, %v968_v35 }
 0x891   :  { %v971_v39 = vrot.slane %v970_v38, 2 }
 0x893   :  { %v972_v40 = vadd.f32 %v971_v39, %v970_v38 }
 0x895   :  { %v973_v41 = vrot.slane %v972_v40, 1 }
 0x897   :  { %v974_v42 = vadd.f32 %v973_v41, %v972_v40 }
 0x899   :  { %v982_v43 = vmul.f32 %v974_v42, %v974_v42  ;;  %v995_v50 = vmul.f32 0.015625, %v974_v42 }
 0x89b   :  { %v983_v44 = vmul.f32 0.015625, %v982_v43 }
 0x89d   :  { %985 = vrot.lane.b32.xlu1 %v983_v44, %s1324_s3 }
 0x90f   :  { %v986_v47 = vpop.permute.xlu1 %985 }
 0x910   :  { %v988_v48 = vsub.f32 %v974_v42, %v986_v47 }
 0x912   :  { %1268 = vrsqrt.f32 %v988_v48 }
 0x913   :  { %1270 = vrsqrt.f32 %v974_v42 }
 0x91f   :  { %v1269_v49 = vpop.eup %1268 }
 0x920   :  { %991 = vrot.lane.b32.xlu0 %v1269_v49, %s1325_s30  ;;  %v1271_v52 = vpop.eup %1270 }
 0x921   :  { %v976_v53 = vmul.f32 %v1271_v52, %v974_v42 }
 0x924   :  { %1001 = vrot.lane.b32.xlu0 %v995_v50, %s1326_s6 }
 0x925   :  { %1283 = shalt.err (!%p1280_p4)
}
 0x926   :  { %1020 = dma.vmem_to_hbm [thread:$0]  %s1018_s8, 128, %s1593_s4, [#allocation3]   ;;  %vm977_vm10 = vcmp.eq.f32.partialorder %v974_v42, inf  ;;  %v980_v55 = vand.u32 2147483648, %v974_v42  ;;  %vm979_vm11 = vcmp.eq.f32.partialorder %v974_v42, 0.0  ;;  %vm1005_vm12 = vcmask 15360  }
 0x927   :  { %v978_v54 = vsel %vm977_vm10, %v974_v42, %v976_v53  ;;  %s1328_s12 = smov [#allocation4]   ;;  %vm1007_vm13 = vcmask 23552   ;;  %vm1009_vm14 = vcmask 24576  }
 0x928   :  { %v981_v51 = vsel %vm979_vm11, %v980_v55, %v978_v54  ;;  %s1027_s13 = sshll.u32 %s1328_s12, 4  ;;  %s1028_s13 = int_to_ptr.vmem [resolvable:$true] %s1027_s13 }
 0x929   :  { %s1292_s4 = scalar_lea.vmem %s1028_s13, 16  ;;  %s1296_s14 = scalar_lea.vmem %s1028_s13, 32 }
 0x92a   :  { %p1293_p5 = scmp.ne.s32.totalorder %s1028_s13, %s1292_s4  ;;  %p1297_p6 = scmp.lt.s32.totalorder %s1028_s13, %s1028_s13 }
 0x92b   :  { %p1298_p7 = scmp.lt.s32.totalorder %s1296_s14, %s1292_s4 }
 0x92d   :  { %p1299_p8 = por %p1298_p7, %p1297_p6 }
 0x92f   :  { %p1300_p9 = pnand %p1299_p8, %p1293_p5 }
 0x992   :  { %v992_v56 = vpop.permute.xlu0 %991 }
 0x993   :  { %v994_v58 = vmul.f32 %v992_v56, %v981_v51 }
 0x995   :  { %997 = vrot.lane.b32.xlu1 %v994_v58, %s1324_s3 }
 0x996   :  { %v1002_v45 = vpop.permute.xlu0 %1001 }
 0xa07   :  { %v998_v57 = vpop.permute.xlu1 %997 }
 0xa08   :  { %v1004_v59 = vsel %vm626_vm5, %v995_v50, %v998_v57 }
 0xa09   :  { %v1006_v46 = vsel %vm1005_vm12, %v1004_v59, %v995_v50 }
 0xa0a   :  { %v1008_v60 = vsel %vm1007_vm13, %v1006_v46, %v1002_v45 }
 0xa0b   :  { %1010 = vst.msk [vmem:[#allocation4] sm:$0x1] %vm1009_vm14, %v1008_v60 }
 0xa0c   :  { %1303 = shalt.err (!%p1300_p9)
}
 0xa0d   :  { %1030 = dma.vmem_to_hbm [thread:$0]  %s1028_s13, 16, %s1594_s5, [#allocation5]  }
 0xa0e   :  { %1312 = dma.done.wait [#allocation3], 128  }
 0xa0f   :  { %1313 = vsyncadd [#allocation3], 4294967168 }
 0xa10   :  { %1314 = dma.done.wait [#allocation5], 16  }
 0xa11   :  { %1315 = vsyncadd [#allocation5], 4294967280 }
 0xa12   :  { %1037 = vsyncpa [#allocation3], 1 }
 0xa13   :  { %1038 = vsyncpa [#allocation5], 1 }

</bundles_post_ra>
